<compile_context>
chip_gen: v7x
topology: tpu7x:2x2x1
jax: 0.10.0
libtpu: 0.0.40
codegen_flags: <defaults>
</compile_context>

<pallas_src>
import functools

import jax
import jax.numpy as jnp
from jax.experimental import pallas as pl
from jax.experimental.pallas import tpu as pltpu


def _round_up(x, m):
    return (x + m - 1) // m * m


def _cdiv(a, b):
    return (a + b - 1) // b


def _focal_tversky_sums_kernel(pred_ref, tgt_ref, acc_ref, *, ignore_index,
                               hw, tiles_per_par, needs_mask):
    """One grid step processes one spatial tile of all batches/classes.

    pred_ref: (N, C, T) logits tile (any float dtype; upcast to f32)
    tgt_ref:  (N, T)    integer labels tile (any int dtype; upcast to int32)
    acc_ref:  (3, N, C) float32 accumulator (resident across the reduction
              axis; one partial copy per parallel-grid index):
              slot 0 = tp, slot 1 = sum(p * valid), slot 2 = sum(onehot*valid)
    """
    par = pl.program_id(0)
    t = pl.program_id(1)

    @pl.when(t == 0)
    def _init():
        acc_ref[...] = jnp.zeros_like(acc_ref)

    logits = pred_ref[...].astype(jnp.float32)              # (N, C, T)
    _, num_classes, tile = logits.shape

    # Numerically stable softmax over the class axis (dim=1).
    m = jnp.max(logits, axis=1, keepdims=True)               # (N, 1, T)
    e = jnp.exp(logits - m)                                   # EUP
    denom = jnp.sum(e, axis=1, keepdims=True)                 # (N, 1, T)
    p = e * pl.reciprocal(denom, approx=True)                 # EUP vrcp slot

    tgt = tgt_ref[...].astype(jnp.int32)                      # (N, T)
    valid_px = tgt != ignore_index                            # (N, T) bool
    if needs_mask:
        # Global lane index of this tile; lanes >= HW are garbage (partial /
        # clamped DMA) and must contribute exactly zero.
        start = (par * tiles_per_par + t) * tile              # traced scalar
        lane = jax.lax.broadcasted_iota(jnp.int32, (1, tile), 1)
        valid_px = valid_px & ((start + lane) < hw)           # (N, T)

    # Fold validity into the label once: invalid pixels get sentinel -1,
    # which never matches any class, so the (N,C,T) mask needs no extra AND.
    tgt_m = jnp.where(valid_px, jnp.clip(tgt, 0, num_classes - 1), -1)
    cls_iota = jax.lax.broadcasted_iota(jnp.int32, (1, num_classes, 1), 1)
    mask = tgt_m[:, None, :] == cls_iota                      # (N, C, T) bool

    zero = jnp.float32(0.0)
    one = jnp.float32(1.0)
    # jnp.where is a select: NaN/garbage in unselected tail lanes never leaks.
    tp = jnp.sum(jnp.where(mask, p, zero), axis=-1)           # (N, C)
    sp = jnp.sum(jnp.where(valid_px[:, None, :], p, zero), axis=-1)
    st = jnp.sum(jnp.where(mask, one, zero), axis=-1)

    acc_ref[0] += tp
    acc_ref[1] += sp
    acc_ref[2] += st


def focal_tversky_loss_pallas(pred, target, *, smooth=1e-8, alpha=0.3,
                              beta=0.7, gamma=1.3, ignore_index=255,
                              class_weight=None, loss_weight=1.0,
                              reduction="mean", max_tile_lanes=None):
    """Matches FocalTverskyLoss.forward (avg_factor=None).

    pred may be float32 or bfloat16 (bf16 halves HBM traffic; kernel upcasts).
    target may be any integer dtype; narrow dtypes (uint8/int16) are read as-is
    to cut label HBM traffic.  `max_tile_lanes` is a test/tuning override.
    """
    N, C, H, W = pred.shape
    HW = H * W
    pred_r = pred.reshape(N, C, HW)            # no dtype cast: avoid HBM pass

    tgt_r = target.reshape(N, HW)
    if tgt_r.dtype not in (jnp.uint8, jnp.int8, jnp.int16, jnp.int32):
        tgt_r = tgt_r.astype(jnp.int32)

    # ---- VMEM-budgeted spatial tile (lane axis) -----------------------------
    try:
        vmem_cap = int(pltpu.get_tpu_info().vmem_capacity_bytes)
    except Exception:
        vmem_cap = 64 * 1024 * 1024            # conservative fallback (v7x)
    vmem_limit = min(max(vmem_cap - 16 * 1024 * 1024, 32 * 1024 * 1024),
                     96 * 1024 * 1024)

    C_pad = _round_up(C, 8)                    # f32 sublane padding
    pred_item = jnp.dtype(pred_r.dtype).itemsize
    tgt_item = jnp.dtype(tgt_r.dtype).itemsize
    bytes_per_lane = (2 * N * C_pad * pred_item    # double-buffered pred blocks
                      + 2 * N * tgt_item           # double-buffered target
                      + 8 * N * C_pad * 4          # ~8 live f32 temporaries
                      + N * C_pad)                 # bool mask
    budget = vmem_limit // 2                       # headroom for Mosaic scratch
    tile_cap = max(128, min(32768, (budget // bytes_per_lane) // 128 * 128))
    if max_tile_lanes is not None:
        tile_cap = max(128, min(tile_cap, (max_tile_lanes // 128) * 128))

    HW_r = _round_up(HW, 128)
    if HW_r <= tile_cap:
        # Single full-extent block: exact, no padding, no tail masking.
        num_par, num_tiles, tiles_per_par = 1, 1, 1
        tile = HW
    else:
        # Balanced split into equal 128-multiple tiles; <128 wasted lanes per
        # tile (plus at most one clamped excess tile from the 2-way round-up).
        num_tiles0 = _cdiv(HW_r, tile_cap)
        num_par = 2 if num_tiles0 >= 2 else 1      # both TCs on v7x
        num_tiles = _round_up(num_tiles0, num_par)
        tile = _round_up(_cdiv(HW_r, num_tiles), 128)
        tiles_per_par = num_tiles // num_par
    needs_mask = (num_tiles * tile != HW)
    last_blk = max(_cdiv(HW, tile) - 1, 0)

    def pred_map(p, t):
        # Clamp so excess tiles re-read an in-bounds block (their contribution
        # is zeroed by the in-kernel lane mask).
        return (0, 0, jnp.minimum(p * tiles_per_par + t, last_blk))

    def tgt_map(p, t):
        return (0, jnp.minimum(p * tiles_per_par + t, last_blk))

    kernel = functools.partial(_focal_tversky_sums_kernel,
                               ignore_index=ignore_index, hw=HW,
                               tiles_per_par=tiles_per_par,
                               needs_mask=needs_mask)

    sums = pl.pallas_call(
        kernel,
        out_shape=jax.ShapeDtypeStruct((num_par, 3, N, C), jnp.float32),
        grid_spec=pltpu.PrefetchScalarGridSpec(
            num_scalar_prefetch=0,
            grid=(num_par, tiles_per_par),
            in_specs=[
                pl.BlockSpec((N, C, tile), pred_map),
                pl.BlockSpec((N, tile), tgt_map),
            ],
            out_specs=pl.BlockSpec((None, 3, N, C),
                                   lambda p, t: (p, 0, 0, 0)),
        ),
        compiler_params=pltpu.CompilerParams(
            dimension_semantics=("parallel", "arbitrary"),
            vmem_limit_bytes=int(vmem_limit)),
    )(pred_r, tgt_r)

    # ---- Tiny O(N*C) epilogue ------------------------------------------------
    acc = jnp.sum(sums, axis=0)                 # reduce parallel partials
    tp, s_p, s_t = acc[0], acc[1], acc[2]
    fp = jnp.maximum(s_p - tp, 0.0)             # >= 0 mathematically; clamp
    fn = jnp.maximum(s_t - tp, 0.0)             # against float cancellation

    tversky = (tp + smooth) / (tp + alpha * fp + beta * fn + smooth)
    per_class = jnp.power(1.0 - tversky, gamma)          # (N, C)
    if class_weight is not None:
        per_class = per_class * jnp.asarray(class_weight, jnp.float32)[None, :]
    per_sample = jnp.sum(per_class, axis=1) / C          # (N,)

    if reduction == "mean":
        loss = jnp.mean(per_sample)
    elif reduction == "sum":
        loss = jnp.sum(per_sample)
    else:  # 'none'
        loss = per_sample
    # TODO(synk): class_weight-from-file path of mmseg's get_class_weight is
    # not implemented (host-side file I/O); pass a list/array instead.
    return loss_weight * loss


def _reference_loss(pred, target, *, smooth=1e-8, alpha=0.3, beta=0.7,
                    gamma=1.3, ignore_index=255, loss_weight=1.0):
    """Pure-JAX reference mirroring the PyTorch implementation."""
    N, C, H, W = pred.shape
    p = jax.nn.softmax(pred.astype(jnp.float32), axis=1)
    tgt = target.astype(jnp.int32)
    valid = (tgt != ignore_index).astype(jnp.float32)
    one_hot = jax.nn.one_hot(jnp.clip(tgt, 0, C - 1), C, dtype=jnp.float32)
    total = 0.0
    for i in range(C):
        pi = p[:, i].reshape(N, -1)
        ti = one_hot[..., i].reshape(N, -1)
        vi = valid.reshape(N, -1)
        tp_s = jnp.sum(pi * ti * vi, axis=1)
        fp_s = jnp.sum(pi * (1 - ti) * vi, axis=1)
        fn_s = jnp.sum((1 - pi) * ti * vi, axis=1)
        tversky = (tp_s + smooth) / (tp_s + alpha * fp_s + beta * fn_s + smooth)
        total = total + jnp.power(1 - tversky, gamma)
    per_sample = total / C
    return loss_weight * jnp.mean(per_sample)


if __name__ == "__main__":
    key = jax.random.PRNGKey(0)

    def run_case(case_key, N, C, H, W, *, label_dtype=jnp.int32,
                 max_tile_lanes=None):
        k1, k2, k3 = jax.random.split(case_key, 3)
        pred = jax.random.normal(k1, (N, C, H, W), dtype=jnp.float32)
        target = jax.random.randint(k2, (N, H, W), 0, C, dtype=jnp.int32)
        ignore_mask = jax.random.bernoulli(k3, 0.1, (N, H, W))
        target = jnp.where(ignore_mask, jnp.int32(255), target)
        target = target.astype(label_dtype)

        loss = jax.block_until_ready(
            focal_tversky_loss_pallas(pred, target,
                                      max_tile_lanes=max_tile_lanes))
        ref = _reference_loss(pred, target)
        # approx=True reciprocal in the softmax -> relaxed tolerance.
        assert jnp.allclose(loss, ref, rtol=5e-3, atol=1e-5), (loss, ref)

    keys = jax.random.split(key, 4)
    # single tile, 128-aligned, int32 labels
    run_case(keys[0], 2, 4, 16, 16)
    # single full-extent tile, HW=900 not 128-aligned, uint8 labels
    run_case(keys[1], 2, 4, 30, 30, label_dtype=jnp.uint8)
    # multi-tile + 2-way parallel split, exact coverage (9216 = 18 * 512)
    run_case(keys[2], 2, 4, 96, 96, label_dtype=jnp.uint8, max_tile_lanes=512)
    # multi-tile with ragged tail + clamped excess tile (HW=2500, tile=512)
    run_case(keys[3], 2, 4, 50, 50, label_dtype=jnp.uint8, max_tile_lanes=512)

    print("KERNEL_OK")
</pallas_src>

<mosaic_0001>
module attributes {stable_mosaic.version = 11 : i64} {
  func.func @_focal_tversky_sums_kernel(%arg0: i32, %arg1: i32, %arg2: memref<2x4x256xf32, #tpu.memory_space<vmem>>, %arg3: memref<2x256xi32, #tpu.memory_space<vmem>>, %arg4: memref<1x3x2x4xf32, #tpu.memory_space<vmem>>) attributes {dimension_semantics = [#tpu.dimension_semantics<parallel>, #tpu.dimension_semantics<arbitrary>], iteration_bounds = array<i64: 1, 1>, scalar_prefetch = 0 : i64, scratch_operands = 0 : i64, tpu.core_type = #tpu.core_type<tc>, window_params = [{transform_indices = @transform_0, window_bounds = array<i64: 2, 4, 256>}, {transform_indices = @transform_1, window_bounds = array<i64: 2, 256>}, {transform_indices = @transform_2, window_bounds = array<i64: 1, 3, 2, 4>}]} {
    %c0_i32 = arith.constant 0 : i32
    %0 = arith.cmpi eq, %arg1, %c0_i32 : i32
    %1 = arith.extui %0 : i1 to i32
    %c0_i32_0 = arith.constant 0 : i32
    %2 = arith.cmpi ne, %1, %c0_i32_0 : i32
    scf.if %2 {
      %cst_36 = arith.constant 0.000000e+00 : f32
      %59 = vector.broadcast %cst_36 : f32 to vector<3x2x4xf32>
      %c0_37 = arith.constant 0 : index
      %c0_38 = arith.constant 0 : index
      %c0_39 = arith.constant 0 : index
      %c0_40 = arith.constant 0 : index
      %60 = vector.load %arg4[%c0_37, %c0_38, %c0_39, %c0_40] : memref<1x3x2x4xf32, #tpu.memory_space<vmem>>, vector<1x3x2x4xf32>
      %61 = vector.shape_cast %60 : vector<1x3x2x4xf32> to vector<3x2x4xf32>
      %62 = vector.shape_cast %59 : vector<3x2x4xf32> to vector<1x3x2x4xf32>
      tpu.vector_store %arg4[%c0_37, %c0_38, %c0_39, %c0_40], %62 {strides = array<i32>} : memref<1x3x2x4xf32, #tpu.memory_space<vmem>>, vector<1x3x2x4xf32>,
    } else {
    }
    %c0 = arith.constant 0 : index
    %c0_1 = arith.constant 0 : index
    %c0_2 = arith.constant 0 : index
    %3 = vector.load %arg2[%c0, %c0_1, %c0_2] : memref<2x4x256xf32, #tpu.memory_space<vmem>>, vector<2x4x256xf32>
    %cst = arith.constant dense<0xFF800000> : vector<2x256xf32>
    %4 = vector.multi_reduction <maximumf>, %3, %cst [1] : vector<2x4x256xf32> to vector<2x256xf32>
    %5 = vector.shape_cast %4 : vector<2x256xf32> to vector<2x1x256xf32>
    %6 = vector.broadcast %5 : vector<2x1x256xf32> to vector<2x4x256xf32>
    %7 = arith.subf %3, %6 : vector<2x4x256xf32>
    %8 = math.exp %7 : vector<2x4x256xf32>
    %cst_3 = arith.constant dense<0.000000e+00> : vector<2x256xf32>
    %9 = vector.multi_reduction <add>, %8, %cst_3 [1] : vector<2x4x256xf32> to vector<2x256xf32>
    %10 = vector.shape_cast %9 : vector<2x256xf32> to vector<2x1x256xf32>
    %11 = tpu.reciprocal %10 {approx = true} : vector<2x1x256xf32> -> vector<2x1x256xf32>
    %12 = vector.broadcast %11 : vector<2x1x256xf32> to vector<2x4x256xf32>
    %13 = arith.mulf %8, %12 : vector<2x4x256xf32>
    %c0_4 = arith.constant 0 : index
    %c0_5 = arith.constant 0 : index
    %14 = vector.load %arg3[%c0_4, %c0_5] : memref<2x256xi32, #tpu.memory_space<vmem>>, vector<2x256xi32>
    %c255_i32 = arith.constant 255 : i32
    %15 = vector.broadcast %c255_i32 : i32 to vector<2x256xi32>
    %16 = arith.cmpi ne, %14, %15 : vector<2x256xi32>
    %c0_i32_6 = arith.constant 0 : i32
    %c3_i32 = arith.constant 3 : i32
    %17 = vector.broadcast %c0_i32_6 : i32 to vector<2x256xi32>
    %18 = arith.maxsi %17, %14 : vector<2x256xi32>
    %19 = vector.broadcast %c3_i32 : i32 to vector<2x256xi32>
    %20 = arith.minsi %19, %18 : vector<2x256xi32>
    %c-1_i32 = arith.constant -1 : i32
    %21 = vector.broadcast %c-1_i32 : i32 to vector<2x256xi32>
    %22 = arith.select %16, %20, %21 : vector<2x256xi1>, vector<2x256xi32>
    %23 = tpu.iota {dimensions = array<i32: 1>} : vector<1x4x1xi32>
    %24 = vector.shape_cast %22 : vector<2x256xi32> to vector<2x1x256xi32>
    %25 = vector.broadcast %24 : vector<2x1x256xi32> to vector<2x4x256xi32>
    %26 = vector.broadcast %23 : vector<1x4x1xi32> to vector<2x4x256xi32>
    %27 = arith.cmpi eq, %25, %26 : vector<2x4x256xi32>
    %cst_7 = arith.constant 0.000000e+00 : f32
    %28 = vector.broadcast %cst_7 : f32 to vector<2x4x256xf32>
    %29 = arith.select %27, %13, %28 : vector<2x4x256xi1>, vector<2x4x256xf32>
    %cst_8 = arith.constant dense<0.000000e+00> : vector<2x4xf32>
    %30 = vector.multi_reduction <add>, %29, %cst_8 [2] : vector<2x4x256xf32> to vector<2x4xf32>
    %31 = vector.shape_cast %16 : vector<2x256xi1> to vector<2x1x256xi1>
    %cst_9 = arith.constant 0.000000e+00 : f32
    %32 = vector.shape_cast %31 : vector<2x1x256xi1> to vector<2x1x256xi1>
    %33 = vector.broadcast %32 : vector<2x1x256xi1> to vector<2x4x256xi1>
    %34 = vector.broadcast %cst_9 : f32 to vector<2x4x256xf32>
    %35 = arith.select %33, %13, %34 : vector<2x4x256xi1>, vector<2x4x256xf32>
    %cst_10 = arith.constant dense<0.000000e+00> : vector<2x4xf32>
    %36 = vector.multi_reduction <add>, %35, %cst_10 [2] : vector<2x4x256xf32> to vector<2x4xf32>
    %cst_11 = arith.constant 1.000000e+00 : f32
    %cst_12 = arith.constant 0.000000e+00 : f32
    %37 = vector.broadcast %cst_11 : f32 to vector<2x4x256xf32>
    %38 = vector.broadcast %cst_12 : f32 to vector<2x4x256xf32>
    %39 = arith.select %27, %37, %38 : vector<2x4x256xi1>, vector<2x4x256xf32>
    %cst_13 = arith.constant dense<0.000000e+00> : vector<2x4xf32>
    %40 = vector.multi_reduction <add>, %39, %cst_13 [2] : vector<2x4x256xf32> to vector<2x4xf32>
    %c0_14 = arith.constant 0 : index
    %c0_15 = arith.constant 0 : index
    %c0_16 = arith.constant 0 : index
    %c0_17 = arith.constant 0 : index
    %41 = vector.load %arg4[%c0_14, %c0_15, %c0_16, %c0_17] : memref<1x3x2x4xf32, #tpu.memory_space<vmem>>, vector<1x1x2x4xf32>
    %42 = vector.shape_cast %41 : vector<1x1x2x4xf32> to vector<2x4xf32>
    %43 = arith.addf %42, %30 : vector<2x4xf32>
    %c0_18 = arith.constant 0 : index
    %c0_19 = arith.constant 0 : index
    %c0_20 = arith.constant 0 : index
    %c0_21 = arith.constant 0 : index
    %44 = vector.load %arg4[%c0_18, %c0_19, %c0_20, %c0_21] : memref<1x3x2x4xf32, #tpu.memory_space<vmem>>, vector<1x1x2x4xf32>
    %45 = vector.shape_cast %44 : vector<1x1x2x4xf32> to vector<2x4xf32>
    %46 = vector.shape_cast %43 : vector<2x4xf32> to vector<1x1x2x4xf32>
    tpu.vector_store %arg4[%c0_18, %c0_19, %c0_20, %c0_21], %46 {strides = array<i32>} : memref<1x3x2x4xf32, #tpu.memory_space<vmem>>, vector<1x1x2x4xf32>,
    %c0_22 = arith.constant 0 : index
    %c1 = arith.constant 1 : index
    %c0_23 = arith.constant 0 : index
    %c0_24 = arith.constant 0 : index
    %47 = vector.load %arg4[%c0_22, %c1, %c0_23, %c0_24] : memref<1x3x2x4xf32, #tpu.memory_space<vmem>>, vector<1x1x2x4xf32>
    %48 = vector.shape_cast %47 : vector<1x1x2x4xf32> to vector<2x4xf32>
    %49 = arith.addf %48, %36 : vector<2x4xf32>
    %c0_25 = arith.constant 0 : index
    %c1_26 = arith.constant 1 : index
    %c0_27 = arith.constant 0 : index
    %c0_28 = arith.constant 0 : index
    %50 = vector.load %arg4[%c0_25, %c1_26, %c0_27, %c0_28] : memref<1x3x2x4xf32, #tpu.memory_space<vmem>>, vector<1x1x2x4xf32>
    %51 = vector.shape_cast %50 : vector<1x1x2x4xf32> to vector<2x4xf32>
    %52 = vector.shape_cast %49 : vector<2x4xf32> to vector<1x1x2x4xf32>
    tpu.vector_store %arg4[%c0_25, %c1_26, %c0_27, %c0_28], %52 {strides = array<i32>} : memref<1x3x2x4xf32, #tpu.memory_space<vmem>>, vector<1x1x2x4xf32>,
    %c0_29 = arith.constant 0 : index
    %c2 = arith.constant 2 : index
    %c0_30 = arith.constant 0 : index
    %c0_31 = arith.constant 0 : index
    %53 = vector.load %arg4[%c0_29, %c2, %c0_30, %c0_31] : memref<1x3x2x4xf32, #tpu.memory_space<vmem>>, vector<1x1x2x4xf32>
    %54 = vector.shape_cast %53 : vector<1x1x2x4xf32> to vector<2x4xf32>
    %55 = arith.addf %54, %40 : vector<2x4xf32>
    %c0_32 = arith.constant 0 : index
    %c2_33 = arith.constant 2 : index
    %c0_34 = arith.constant 0 : index
    %c0_35 = arith.constant 0 : index
    %56 = vector.load %arg4[%c0_32, %c2_33, %c0_34, %c0_35] : memref<1x3x2x4xf32, #tpu.memory_space<vmem>>, vector<1x1x2x4xf32>
    %57 = vector.shape_cast %56 : vector<1x1x2x4xf32> to vector<2x4xf32>
    %58 = vector.shape_cast %55 : vector<2x4xf32> to vector<1x1x2x4xf32>
    tpu.vector_store %arg4[%c0_32, %c2_33, %c0_34, %c0_35], %58 {strides = array<i32>} : memref<1x3x2x4xf32, #tpu.memory_space<vmem>>, vector<1x1x2x4xf32>,
    return
  }
  func.func @transform_0(%arg0: i32, %arg1: i32) -> (i32, i32, i32) {
    %c1_i32 = arith.constant 1 : i32
    %0 = arith.muli %arg0, %c1_i32 : i32
    %1 = arith.addi %0, %arg1 : i32
    %c0_i32 = arith.constant 0 : i32
    %2 = arith.minsi %1, %c0_i32 : i32
    %c0_i32_0 = arith.constant 0 : i32
    %c0_i32_1 = arith.constant 0 : i32
    %c0_i32_2 = arith.constant 0 : i32
    return %c0_i32_0, %c0_i32_1, %2 : i32, i32, i32
  }
  func.func @transform_1(%arg0: i32, %arg1: i32) -> (i32, i32) {
    %c1_i32 = arith.constant 1 : i32
    %0 = arith.muli %arg0, %c1_i32 : i32
    %1 = arith.addi %0, %arg1 : i32
    %c0_i32 = arith.constant 0 : i32
    %2 = arith.minsi %1, %c0_i32 : i32
    %c0_i32_0 = arith.constant 0 : i32
    %c0_i32_1 = arith.constant 0 : i32
    return %c0_i32_0, %2 : i32, i32
  }
  func.func @transform_2(%arg0: i32, %arg1: i32) -> (i32, i32, i32, i32) {
    %c0_i32 = arith.constant 0 : i32
    %c0_i32_0 = arith.constant 0 : i32
    %c0_i32_1 = arith.constant 0 : i32
    %c0_i32_2 = arith.constant 0 : i32
    return %arg0, %c0_i32, %c0_i32_0, %c0_i32_1 : i32, i32, i32, i32
  }
}

</mosaic_0001>

<bundles_post_ra>
// kernel: tpu_custom_call.1
= control target key start
LH: loop header
LB: loop body
LE: loop exit
PB: predicated region body
PF: predicated region fallthrough
CT: control target
= control target key end

     0   :  { %7 = vsyncpa [#allocation3], 0  ;;  %s637_s0 = inlined_call_operand.hbm [shape: f32[2,4,256], index: 0, kind: input, shape index: {}]   ;;  %s638_s1 = inlined_call_operand.hbm [shape: s32[2,256], index: 1, kind: input, shape index: {}]   ;;  %s639_s2 = inlined_call_operand.hbm [shape: f32[1,3,2,4], index: 2, kind: output, shape index: {}]  }
   0x1   :  { %8 = vsyncpa [#allocation6], 0 }
   0x2   :  { %9 = vsyncpa [#allocation4], 0  ;;  %s452_s9 = smov [#allocation2]   ;;  %s380_s13 = scalar_lea.hbm %s637_s0, 256 }
   0x3   :  { %s21_s10 = sshll.u32 %s452_s9, 4  ;;  %p381_p0 = scmp.ne.s32.totalorder %s637_s0, %s380_s13  ;;  %s22_s10 = int_to_ptr.vmem [resolvable:$true] %s21_s10 }
   0x4   :  { %p384_p1 = scmp.lt.u32.totalorder %s380_s13, %s637_s0 }
   0x6   :  { %p386_p2 = pnand %p384_p1, %p381_p0 }
   0x8   :  { %389 = shalt.err (!%p386_p2)
}
   0x9   :  { %s390_s18 = scalar_lea.vmem %s22_s10, 256  ;;  %p395_p4 = scmp.lt.s32.totalorder %s22_s10, %s22_s10 }
   0xa   :  { %p391_p3 = scmp.ne.s32.totalorder %s22_s10, %s390_s18  ;;  %p396_p5 = scmp.lt.s32.totalorder %s390_s18, %s390_s18 }
   0xc   :  { %p397_p6 = por %p396_p5, %p395_p4 }
   0xe   :  { %p398_p7 = pnand %p397_p6, %p391_p3 }
  0x10   :  { %401 = shalt.err (!%p398_p7)
}
  0x11   :  { %s453_s19 = smov 128   ;;  %s454_s20 = smov 8  }
  0x12   :  { %27 = dma.hbm_to_vmem [thread:$0]  %s637_s0, 256, %s22_s10, [#allocation3], %s453_s19, %s453_s19, %s454_s20  }
  0x13   :  { %s455_s23 = smov [#allocation5]   ;;  %s402_s27 = scalar_lea.hbm %s638_s1, 64 }
  0x14   :  { %s40_s24 = sshll.u32 %s455_s23, 4  ;;  %p403_p8 = scmp.ne.s32.totalorder %s638_s1, %s402_s27  ;;  %s41_s24 = int_to_ptr.vmem [resolvable:$true] %s40_s24 }
  0x15   :  { %p406_p9 = scmp.lt.u32.totalorder %s402_s27, %s638_s1 }
  0x17   :  { %p408_p10 = pnand %p406_p9, %p403_p8 }
  0x19   :  { %411 = shalt.err (!%p408_p10)
}
  0x1a   :  { %s412_s4 = scalar_lea.vmem %s41_s24, 64  ;;  %p417_p12 = scmp.lt.s32.totalorder %s41_s24, %s41_s24 }
  0x1b   :  { %p413_p11 = scmp.ne.s32.totalorder %s41_s24, %s412_s4  ;;  %p418_p13 = scmp.lt.s32.totalorder %s412_s4, %s412_s4 }
  0x1d   :  { %p419_p0 = por %p418_p13, %p417_p12 }
  0x1f   :  { %p420_p1 = pnand %p419_p0, %p413_p11 }
  0x21   :  { %423 = shalt.err (!%p420_p1)
}
  0x22   :  { %43 = dma.hbm_to_vmem [thread:$0]  %s638_s1, 64, %s41_s24, [#allocation6]  }
  0x23   :  { %446 = dma.done.wait [#allocation3], 256  }
  0x24   :  { %447 = vsyncadd [#allocation3], 4294967040 }
  0x25   :  { %448 = dma.done.wait [#allocation6], 64  }
  0x26   :  { %449 = vsyncadd [#allocation6], 4294967232  ;;  %v172_v0 = vlaneseq  ;;  %vm62_vm0 = vcmask 25600   ;;  %v456_v2 = vmov 0.0   ;;  %vm74_vm1 = vcmask 1043456   ;;  %v66_v5 = vld [vmem:[#allocation2] sm:$0xff] }
  0x27   :  { %63 = vst.msk [vmem:[#allocation7] sm:$0x3] %vm62_vm0, %v456_v2  ;;  %64 = vst.msk [vmem:[#allocation7 + $0x2] sm:$0x3] %vm62_vm0, %v456_v2  ;;  %v67_v6 = vld [vmem:[#allocation2 + $0x8] sm:$0xff]  ;;  %v70_v7 = vcombine.high %v66_v5, %v66_v5  ;;  %v75_v8 = vsel %vm74_vm1, %v66_v5, -inf }
  0x28   :  { %v501_v1 = vshrl.u32 %v172_v0, 7  ;;  %65 = vst.msk [vmem:[#allocation7 + $0x4] sm:$0x3] %vm62_vm0, %v456_v2  ;;  %v287_v3 = vand.u32 127, %v172_v0  ;;  %v76_v9 = vrot.slane %v75_v8, 4  ;;  %v71_v10 = vcombine.high %v67_v6, %v67_v6  ;;  %s459_s1 = smov [#allocation7]  }
  0x29   :  { %v82_v11 = vsel %vm74_vm1, %v70_v7, -inf  ;;  %v89_v12 = vsel %vm74_vm1, %v67_v6, -inf  ;;  %v165_v47 = vld [vmem:[#allocation5] sm:$0xf]  ;;  %v457_v48 = vmov 1966171168  }
  0x2a   :  { %v510_v4 = vsub.s32 %v287_v3, %v501_v1  ;;  %v77_v13 = vmax.f32 %v75_v8, %v76_v9  ;;  %v83_v14 = vrot.slane %v82_v11, 4  ;;  %v90_v15 = vrot.slane %v89_v12, 4  ;;  %s339_s6 = sshll.u32 %s459_s1, 4  ;;  %s340_s6 = int_to_ptr.vmem [resolvable:$true] %s339_s6 }
  0x2b   :  { %v96_v16 = vsel %vm74_vm1, %v71_v10, -inf  ;;  %v175_v49 = vunpack.c.l.s4 %v457_v48  ;;  %vm167_vm2 = vcmp.gt.s32.totalorder %v165_v47, 0  ;;  %vm166_vm3 = vcmp.ne.s32.totalorder %v165_v47, 255  ;;  %s424_s7 = scalar_lea.vmem %s340_s6, 96  ;;  %p429_p3 = scmp.lt.s32.totalorder %s340_s6, %s340_s6 }
  0x2c   :  { %v78_v17 = vrot.slane %v77_v13, 2  ;;  %v84_v18 = vmax.f32 %v82_v11, %v83_v14  ;;  %v91_v19 = vmax.f32 %v89_v12, %v90_v15  ;;  %v97_v20 = vrot.slane %v96_v16, 4  ;;  %p425_p2 = scmp.ne.s32.totalorder %s340_s6, %s424_s7  ;;  %p430_p4 = scmp.lt.s32.totalorder %s424_s7, %s424_s7 }
  0x2d   :  { %v176_v59 = vunpack.c.0.s8 %v175_v49  ;;  %v168_v3 = vsel %vm167_vm2, %v165_v47, 0  ;;  %v458_v10 = vmov 0   ;;  %vm296_vm15 = vcmask 1041409  }
  0x2e   :  { %v79_v21 = vmax.f32 %v77_v13, %v78_v17  ;;  %v85_v22 = vrot.slane %v84_v18, 2  ;;  %v92_v23 = vrot.slane %v91_v19, 2  ;;  %v98_v24 = vmax.f32 %v96_v16, %v97_v20  ;;  %p431_p5 = por %p430_p4, %p429_p3 }
  0x2f   :  { %v179_v9 = vsub.s32 %v176_v59, %v501_v1  ;;  %v222_v11 = vsel %vm166_vm3, 1, %v458_v10  ;;  %vm169_vm4 = vcmp.lt.s32.totalorder %v168_v3, 3 }
  0x30   :  { %v80_v25 = vrot.slane %v79_v21, 1  ;;  %v86_v26 = vmax.f32 %v84_v18, %v85_v22  ;;  %v93_v27 = vmax.f32 %v91_v19, %v92_v23  ;;  %v99_v28 = vrot.slane %v98_v24, 2  ;;  %p432_p6 = pnand %p431_p5, %p425_p2 }
  0x31   :  { %v229_v19 = vrot.slane %v222_v11, %v179_v9  ;;  %v170_v20 = vsel %vm169_vm4, %v168_v3, 3 }
  0x32   :  { %v81_v29 = vmax.f32 %v79_v21, %v80_v25  ;;  %v87_v30 = vrot.slane %v86_v26, 1  ;;  %v94_v31 = vrot.slane %v93_v27, 1  ;;  %v100_v32 = vmax.f32 %v98_v24, %v99_v28 }
  0x33   :  { %v230_v23 = vcombine.high %v229_v19, %v229_v19  ;;  %v171_v24 = vsel %vm166_vm3, %v170_v20, 4294967295  ;;  %vm231_vm5 = vcmp.ne.s32.totalorder %v229_v19, 0  ;;  %v188_v28 = vsub.s32 1, %v501_v1 }
  0x34   :  { %v88_v33 = vmax.f32 %v86_v26, %v87_v30  ;;  %v95_v34 = vmax.f32 %v93_v27, %v94_v31  ;;  %v101_v35 = vrot.slane %v100_v32, 1  ;;  %v184_v26 = vsub.s32 0, %v501_v1 }
  0x35   :  { %v180_v27 = vrot.slane %v171_v24, %v179_v9  ;;  %vm232_vm6 = vcmp.ne.s32.totalorder %v230_v23, 0 }
  0x36   :  { %v107_v36 = vcombine.low %v81_v29, %v88_v33  ;;  %v102_v37 = vmax.f32 %v100_v32, %v101_v35  ;;  %v233_v29 = vsel %vm231_vm5, 1, %v458_v10  ;;  %v234_v30 = vsel %vm232_vm6, 1, %v458_v10 }
  0x37   :  { %v181_v31 = vcombine.high %v180_v27, %v180_v27  ;;  %v238_v33 = vrot.slane %v233_v29, %v184_v26  ;;  %v242_v35 = vrot.slane %v233_v29, %v188_v28 }
  0x38   :  { %v111_v38 = vsub.f32 %v66_v5, %v107_v36  ;;  %v108_v39 = vcombine.low %v95_v34, %v102_v37  ;;  %v185_v34 = vrot.slane %v180_v27, %v184_v26  ;;  %v189_v36 = vrot.slane %v180_v27, %v188_v28 }
  0x39   :  { %vm535_vm7 = vcmp.eq.s32.totalorder %v238_v33, 1  ;;  %vm545_vm9 = vcmp.eq.s32.totalorder %v242_v35, 1  ;;  %v283_v33 = vld [vmem:[#allocation7] sm:$0x3] }
  0x3a   :  { %v113_v40 = vmul.f32 1.442695, %v111_v38  ;;  %v112_v41 = vsub.f32 %v67_v6, %v108_v39  ;;  %v246_v38 = vrot.slane %v234_v30, %v184_v26  ;;  %v250_v39 = vrot.slane %v234_v30, %v188_v28 }
  0x3b   :  { %vm540_vm8 = vcmp.eq.s32.totalorder %v185_v34, %v501_v1  ;;  %vm550_vm10 = vcmp.eq.s32.totalorder %v189_v36, %v501_v1 }
  0x3c   :  { %368 = vpow2.f32 %v113_v40  ;;  %v115_v42 = vmul.f32 1.442695, %v112_v41  ;;  %vm557_vm11 = vcmp.eq.s32.totalorder %v246_v38, 1  ;;  %vm561_vm12 = vcmp.eq.s32.totalorder %v250_v39, 1 }
  0x3e   :  { %370 = vpow2.f32 %v115_v42  ;;  %v193_v42 = vrot.slane %v181_v31, %v184_v26 }
  0x40   :  { %vm573_vm13 = vcmp.eq.s32.totalorder %v193_v42, %v501_v1  ;;  %v319_v42 = vld [vmem:[#allocation7 + $0x4] sm:$0x3] }
  0x46   :  { %v516_v43 = vpop.eup %368 }
  0x47   :  { %v119_v44 = vcombine.high %v516_v43, %v516_v43  ;;  %v123_v45 = vsel %vm74_vm1, %v516_v43, 0.0 }
  0x48   :  { %v124_v46 = vrot.slane %v123_v45, 4  ;;  %v522_v50 = vpop.eup %370 }
  0x49   :  { %v130_v51 = vsel %vm74_vm1, %v119_v44, 0.0  ;;  %v120_v54 = vcombine.high %v522_v50, %v522_v50  ;;  %v137_v55 = vsel %vm74_vm1, %v522_v50, 0.0 }
  0x4a   :  { %v125_v52 = vadd.f32 %v124_v46, %v123_v45  ;;  %v131_v53 = vrot.slane %v130_v51, 4  ;;  %v138_v56 = vrot.slane %v137_v55, 4  ;;  %v197_v46 = vrot.slane %v181_v31, %v188_v28  ;;  %v303_v31 = vld [vmem:[#allocation7 + $0x2] sm:$0x3] }
  0x4b   :  { %v144_v60 = vsel %vm74_vm1, %v120_v54, 0.0 }
  0x4c   :  { %v126_v57 = vrot.slane %v125_v52, 2  ;;  %v132_v58 = vadd.f32 %v131_v53, %v130_v51  ;;  %v139_v61 = vadd.f32 %v138_v56, %v137_v55  ;;  %v145_v62 = vrot.slane %v144_v60, 4 }
  0x4d   :  { %v270_v55 = vsel %vm550_vm10, 1.0, %v456_v2  ;;  %vm581_vm14 = vcmp.eq.s32.totalorder %v197_v46, %v501_v1 }
  0x4e   :  { %v127_v63 = vadd.f32 %v126_v57, %v125_v52  ;;  %v133_v0 = vrot.slane %v132_v58, 2  ;;  %v140_v5 = vrot.slane %v139_v61, 2  ;;  %v146_v6 = vadd.f32 %v145_v62, %v144_v60 }
  0x4f   :  { %v269_v52 = vsel %vm540_vm8, 1.0, %v456_v2 }
  0x50   :  { %v128_v7 = vrot.slane %v127_v63, 1  ;;  %v134_v8 = vadd.f32 %v133_v0, %v132_v58  ;;  %v141_v12 = vadd.f32 %v140_v5, %v139_v61  ;;  %v147_v13 = vrot.slane %v146_v6, 2 }
  0x51   :  { %v271_v5 = vsel %vm573_vm13, 1.0, %v456_v2 }
  0x52   :  { %v129_v14 = vadd.f32 %v128_v7, %v127_v63  ;;  %v135_v15 = vrot.slane %v134_v8, 1  ;;  %v142_v16 = vrot.slane %v141_v12, 1  ;;  %v148_v17 = vadd.f32 %v147_v13, %v146_v6 }
  0x53   :  { %v272_v6 = vsel %vm581_vm14, 1.0, %v456_v2 }
  0x54   :  { %v136_v18 = vadd.f32 %v135_v15, %v134_v8  ;;  %372 = vrcp.f32 %v129_v14  ;;  %v143_v21 = vadd.f32 %v142_v16, %v141_v12  ;;  %v149_v22 = vrot.slane %v148_v17, 1 }
  0x56   :  { %374 = vrcp.f32 %v136_v18  ;;  %v150_v25 = vadd.f32 %v149_v22, %v148_v17  ;;  %v273_v17 = vsel %vm74_vm1, %v269_v52, 0.0  ;;  %v274_v18 = vsel %vm74_vm1, %v270_v55, 0.0 }
  0x57   :  { %376 = vrcp.f32 %v143_v21  ;;  %v278_v21 = vsel %vm74_vm1, %v271_v5, 0.0  ;;  %v279_v22 = vsel %vm74_vm1, %v272_v6, 0.0  ;;  %v275_v24 = vadd.f32 %v274_v18, %v273_v17 }
  0x58   :  { %378 = vrcp.f32 %v150_v25  ;;  %v280_v23 = vadd.f32 %v279_v22, %v278_v21 }
  0x5e   :  { %v373_v32 = vpop.eup %372 }
  0x60   :  { %v375_v37 = vpop.eup %374 }
  0x61   :  { %v377_v40 = vpop.eup %376  ;;  %v159_v41 = vcombine.low %v373_v32, %v375_v37 }
  0x62   :  { %v379_v47 = vpop.eup %378 }
  0x63   :  { %v163_v48 = vmul.f32 %v516_v43, %v159_v41  ;;  %v160_v53 = vcombine.low %v377_v40, %v379_v47 }
  0x65   :  { %v204_v56 = vcombine.high %v163_v48, %v163_v48  ;;  %v255_v57 = vsel %vm535_vm7, %v163_v48, 0.0  ;;  %v208_v58 = vsel %vm540_vm8, %v163_v48, 0.0  ;;  %v164_v62 = vmul.f32 %v522_v50, %v160_v53 }
  0x66   :  { %v259_v60 = vsel %vm74_vm1, %v255_v57, 0.0  ;;  %v212_v61 = vsel %vm74_vm1, %v208_v58, 0.0 }
  0x67   :  { %v256_v0 = vsel %vm545_vm9, %v204_v56, 0.0  ;;  %v209_v3 = vsel %vm550_vm10, %v204_v56, 0.0  ;;  %v205_v7 = vcombine.high %v164_v62, %v164_v62  ;;  %v257_v8 = vsel %vm557_vm11, %v164_v62, 0.0 }
  0x68   :  { %v260_v50 = vsel %vm74_vm1, %v256_v0, 0.0  ;;  %v213_v1 = vsel %vm74_vm1, %v209_v3, 0.0  ;;  %v264_v11 = vsel %vm74_vm1, %v257_v8, 0.0  ;;  %v210_v12 = vsel %vm573_vm13, %v164_v62, 0.0 }
  0x69   :  { %v261_v9 = vadd.f32 %v260_v50, %v259_v60  ;;  %v214_v10 = vadd.f32 %v213_v1, %v212_v61  ;;  %v258_v13 = vsel %vm561_vm12, %v205_v7, 0.0  ;;  %v211_v2 = vsel %vm581_vm14, %v205_v7, 0.0 }
  0x6a   :  { %v217_v14 = vsel %vm74_vm1, %v210_v12, 0.0  ;;  %v265_v15 = vsel %vm74_vm1, %v258_v13, 0.0  ;;  %v218_v16 = vsel %vm74_vm1, %v211_v2, 0.0 }
  0x6b   :  { %262 = vadd.xlane.f32.xlu1 %v261_v9  ;;  %215 = vadd.xlane.f32.xlu0 %v214_v10  ;;  %v266_v19 = vadd.f32 %v265_v15, %v264_v11  ;;  %v219_v20 = vadd.f32 %v218_v16, %v217_v14 }
  0x6f   :  { %267 = vadd.xlane.f32.xlu1 %v266_v19  ;;  %220 = vadd.xlane.f32.xlu0 %v219_v20 }
  0x73   :  { %281 = vadd.xlane.f32.xlu1 %v280_v23  ;;  %276 = vadd.xlane.f32.xlu0 %v275_v24 }
  0xf8   :  { %v263_v25 = vpop.xlane.xlu1 %262  ;;  %v216_v26 = vpop.xlane.xlu0 %215 }
  0xf9   :  { %v309_v29 = vrot.slane %v263_v25, %v510_v4  ;;  %v291_v30 = vrot.slane %v216_v26, %v510_v4 }
  0xfc   :  { %v268_v27 = vpop.xlane.xlu1 %267  ;;  %v221_v28 = vpop.xlane.xlu0 %220 }
  0xfd   :  { %v313_v32 = vrot.slane %v268_v27, %v510_v4  ;;  %v295_v34 = vrot.slane %v221_v28, %v510_v4 }
  0xff   :  { %v314_v35 = vsel %vm296_vm15, %v313_v32, %v309_v29  ;;  %v297_v36 = vsel %vm296_vm15, %v295_v34, %v291_v30 }
 0x100   :  { %v316_v37 = vadd.f32 %v314_v35, %v303_v31  ;;  %v299_v38 = vadd.f32 %v297_v36, %v283_v33  ;;  %v282_v39 = vpop.xlane.xlu1 %281  ;;  %v277_v40 = vpop.xlane.xlu0 %276 }
 0x101   :  { %v329_v41 = vrot.slane %v282_v39, %v510_v4  ;;  %v325_v44 = vrot.slane %v277_v40, %v510_v4 }
 0x102   :  { %317 = vst.msk [vmem:[#allocation7 + $0x2] sm:$0x3] %vm62_vm0, %v316_v37  ;;  %301 = vst.msk [vmem:[#allocation7] sm:$0x3] %vm62_vm0, %v299_v38 }
 0x103   :  { %v330_v45 = vsel %vm296_vm15, %v329_v41, %v325_v44 }
 0x104   :  { %v332_v46 = vadd.f32 %v330_v45, %v319_v42 }
 0x106   :  { %333 = vst.msk [vmem:[#allocation7 + $0x4] sm:$0x3] %vm62_vm0, %v332_v46 }
 0x107   :  { %435 = shalt.err (!%p432_p6)
}
 0x108   :  { %s436_s10 = scalar_lea.hbm %s639_s2, 96 }
 0x109   :  { %p437_p7 = scmp.ne.s32.totalorder %s639_s2, %s436_s10  ;;  %p440_p8 = scmp.lt.u32.totalorder %s436_s10, %s639_s2 }
 0x10b   :  { %p442_p9 = pnand %p440_p8, %p437_p7 }
 0x10d   :  { %445 = shalt.err (!%p442_p9)
}
 0x10e   :  { %s460_s15 = smov 32   ;;  %s461_s16 = smov 2  }
 0x10f   :  { %345 = dma.vmem_to_hbm [thread:$0]  %s340_s6, 96, %s639_s2, [#allocation4], %s460_s15, %s460_s15, %s461_s16  }
 0x110   :  { %450 = dma.done.wait [#allocation4], 96  }
 0x111   :  { %451 = vsyncadd [#allocation4], 4294967200 }
 0x112   :  { %349 = vsyncpa [#allocation3], 1 }
 0x113   :  { %350 = vsyncpa [#allocation6], 1 }
 0x114   :  { %351 = vsyncpa [#allocation4], 1 }

</bundles_post_ra>
